<compile_context>
chip_gen: v5e
topology: v5e:2x2
jax: 0.10.0
libtpu: 0.0.40
codegen_flags: <defaults>
</compile_context>

<pallas_src>
import functools

import jax
import jax.numpy as jnp
from jax.experimental import pallas as pl
from jax.experimental.pallas import tpu as pltpu


def _norm2d_kernel(x_ref, w_ref, o_ref, *, eps, inv_c, use_mxu, compute_dtype):
    """LayerNorm over the channel (sublane) axis of one (C, T) spatial tile."""
    x = x_ref[...]                      # (C, T), native dtype -- no f32 upcast copy
    xx = x * x                          # one VPU pass, native dtype

    if use_mxu:
        # Channel reduction on the (otherwise idle) MXU; f32 accumulation.
        ones = jnp.ones((1, x.shape[0]), dtype=x.dtype)
        s1 = jnp.dot(ones, x, preferred_element_type=jnp.float32)    # (1, T)
        s2 = jnp.dot(ones, xx, preferred_element_type=jnp.float32)   # (1, T)
    else:
        # Tiny C: sublane reduce with f32 accumulation is cheaper/safer.
        s1 = jnp.sum(x, axis=0, keepdims=True, dtype=jnp.float32)
        s2 = jnp.sum(xx, axis=0, keepdims=True, dtype=jnp.float32)

    mean = s1 * inv_c                                  # (1, T) f32
    var = s2 * inv_c - mean * mean                     # single-pass variance
    inv = jax.lax.rsqrt(var + eps)                     # (1, T) f32, EUP

    w = w_ref[...].astype(compute_dtype)               # (C, 1), resident block
    y = (x.astype(compute_dtype) - mean.astype(compute_dtype)) \
        * inv.astype(compute_dtype) * w
    o_ref[...] = y.astype(o_ref.dtype)


def norm2d_pallas(x_nchw, weight, *, eps=1e-5, tile_hw=None, compute_dtype=None,
                  vmem_limit_bytes=None):
    """LayerNorm over the channel dim of an NCHW tensor (Norm2D forward)."""
    B, C, H, W = x_nchw.shape
    HW = H * W
    x3 = x_nchw.reshape(B, C, HW)          # free reshape, no HBM transpose
    itemsize = jnp.dtype(x_nchw.dtype).itemsize

    if compute_dtype is None:
        # Native-dtype elementwise math (bf16 VPU on v6e/v7x).  On v5e pass
        # compute_dtype=jnp.float32 explicitly (no bf16 VALU there).
        compute_dtype = x_nchw.dtype

    # ---- VMEM budget: query physical capacity, stay conservative otherwise ----
    try:
        phys_vmem = int(pltpu.get_tpu_info().vmem_capacity_bytes)
    except Exception:
        phys_vmem = 64 << 20               # assume the smallest (v7x per-TC)
    if vmem_limit_bytes is None:
        vmem_limit_bytes = min(int(phys_vmem * 0.75), 96 << 20)

    # ---- pick a lane-aligned spatial tile from a byte budget ----
    # Per-step footprint model (post-fusion, native-dtype blocks):
    #   2x double-buffered input + 2x output blocks   = 4 * C*T*itemsize
    #   in-kernel temporaries (x*x + fused f32 chain) ~= 2 * C*T*itemsize
    if tile_hw is None:
        block_budget = int(phys_vmem * 0.45)
        per_buffer_cap = 8 << 20           # DMA-size cap per block buffer
        max_tile = min(block_budget // max(1, 6 * C * itemsize),
                       per_buffer_cap // max(1, C * itemsize))
        tile_hw = max(128, max_tile)
    tile_hw = max(1, int(tile_hw))

    if HW <= tile_hw:
        tile_hw = HW                                   # block == full dim (allowed)
    elif HW % 128 == 0:
        # Largest 128-multiple divisor of HW under the cap -> no ragged tail,
        # no pad/slice copies.
        cap = max(128, (tile_hw // 128) * 128)
        t = cap
        while HW % t != 0:
            t -= 128
        if 2 * t >= cap or t >= 1024:
            tile_hw = t
        else:
            tile_hw = cap                              # ragged tail, Pallas-masked
    else:
        # Non-128-multiple HW: lane-aligned tile + cdiv grid; Pallas masks the
        # out-of-bounds part of the final block (no jnp.pad / output slice).
        tile_hw = max(128, (tile_hw // 128) * 128)

    n_s = pl.cdiv(HW, tile_hw)

    # Ensure >=2 grid steps along a parallel axis so both v7x TCs get work.
    if B * n_s < 2 and HW >= 256:
        if HW % 256 == 0:
            tile_hw = HW // 2                          # clean 2-way split
        else:
            tile_hw = max(128, (((HW + 1) // 2 + 127) // 128) * 128)
        n_s = pl.cdiv(HW, tile_hw)

    w2d = weight.reshape(C, 1)
    kernel = functools.partial(
        _norm2d_kernel,
        eps=float(eps),
        inv_c=1.0 / C,
        use_mxu=(C >= 16),
        compute_dtype=compute_dtype,
    )

    out3 = pl.pallas_call(
        kernel,
        out_shape=jax.ShapeDtypeStruct((B, C, HW), x_nchw.dtype),
        grid_spec=pltpu.PrefetchScalarGridSpec(
            num_scalar_prefetch=0,
            grid=(B, n_s),
            in_specs=[
                pl.BlockSpec((pl.Squeezed(), C, tile_hw), lambda b, s: (b, 0, s)),
                pl.BlockSpec((C, 1), lambda b, s: (0, 0)),   # weight stays resident
            ],
            out_specs=pl.BlockSpec((pl.Squeezed(), C, tile_hw),
                                   lambda b, s: (b, 0, s)),
        ),
        compiler_params=pltpu.CompilerParams(
            # Both axes independent -> shard across v7x's 2 TensorCores
            # (no-op on single-TC v5e/v6e).
            dimension_semantics=("parallel", "parallel"),
            vmem_limit_bytes=int(vmem_limit_bytes),
        ),
    )(x3, w2d)

    return out3.reshape(B, C, H, W)


def norm2d_reference(x_nchw, weight, eps=1e-5):
    x = jnp.transpose(x_nchw, (0, 2, 3, 1)).astype(jnp.float32)
    mean = jnp.mean(x, axis=-1, keepdims=True)
    var = jnp.mean((x - mean) ** 2, axis=-1, keepdims=True)
    y = (x - mean) * jax.lax.rsqrt(var + eps) * weight.astype(jnp.float32)
    return jnp.transpose(y, (0, 3, 1, 2)).astype(x_nchw.dtype)


if __name__ == "__main__":
    key = jax.random.PRNGKey(0)

    # --- case 1: small f32, tiny C (sublane-reduce path) ---
    B, C, H, W = 2, 4, 16, 16
    k1, k2 = jax.random.split(key)
    x = jax.random.normal(k1, (B, C, H, W), dtype=jnp.float32)
    # LayerNorm.__init__: weight = ones(dim); use_bias=False -> no bias.
    weight = jnp.ones((C,), dtype=jnp.float32)

    out = jax.block_until_ready(norm2d_pallas(x, weight, eps=1e-5))
    ref = norm2d_reference(x, weight, eps=1e-5)
    assert out.shape == (B, C, H, W)
    assert jnp.allclose(out, ref, atol=1e-4, rtol=1e-4)

    # --- case 2: bf16, larger C (MXU-reduction path, bf16 elementwise) ---
    B2, C2, H2, W2 = 1, 256, 16, 16
    x2 = jax.random.normal(k2, (B2, C2, H2, W2), dtype=jnp.bfloat16)
    weight2 = jnp.ones((C2,), dtype=jnp.float32)

    out2 = jax.block_until_ready(norm2d_pallas(x2, weight2, eps=1e-5))
    ref2 = norm2d_reference(x2, weight2, eps=1e-5)
    assert out2.shape == (B2, C2, H2, W2)
    assert jnp.allclose(out2.astype(jnp.float32), ref2.astype(jnp.float32),
                        atol=1e-1, rtol=5e-2)

    print("KERNEL_OK")
</pallas_src>

<mosaic_0001>
module attributes {stable_mosaic.version = 11 : i64} {
  func.func @_norm2d_kernel(%arg0: i32, %arg1: i32, %arg2: memref<1x4x256xf32, #tpu.memory_space<vmem>>, %arg3: memref<4x1xf32, #tpu.memory_space<vmem>>, %arg4: memref<1x4x256xf32, #tpu.memory_space<vmem>>) attributes {dimension_semantics = [#tpu.dimension_semantics<parallel>, #tpu.dimension_semantics<parallel>], iteration_bounds = array<i64: 2, 1>, scalar_prefetch = 0 : i64, scratch_operands = 0 : i64, tpu.core_type = #tpu.core_type<tc>, window_params = [{transform_indices = @transform_0, window_bounds = array<i64: 1, 4, 256>}, {pipeline_mode = #tpu.pipeline_mode<synchronous>, transform_indices = @transform_1, window_bounds = array<i64: 4, 1>}, {transform_indices = @transform_2, window_bounds = array<i64: 1, 4, 256>}]} {
    %c0 = arith.constant 0 : index
    %c0_0 = arith.constant 0 : index
    %c0_1 = arith.constant 0 : index
    %0 = vector.load %arg2[%c0, %c0_0, %c0_1] : memref<1x4x256xf32, #tpu.memory_space<vmem>>, vector<1x4x256xf32>
    %1 = vector.shape_cast %0 : vector<1x4x256xf32> to vector<4x256xf32>
    %2 = arith.mulf %1, %1 : vector<4x256xf32>
    %cst = arith.constant dense<0.000000e+00> : vector<256xf32>
    %3 = vector.multi_reduction <add>, %1, %cst [0] : vector<4x256xf32> to vector<256xf32>
    %4 = vector.shape_cast %3 : vector<256xf32> to vector<1x256xf32>
    %cst_2 = arith.constant dense<0.000000e+00> : vector<256xf32>
    %5 = vector.multi_reduction <add>, %2, %cst_2 [0] : vector<4x256xf32> to vector<256xf32>
    %6 = vector.shape_cast %5 : vector<256xf32> to vector<1x256xf32>
    %cst_3 = arith.constant 2.500000e-01 : f32
    %7 = vector.broadcast %cst_3 : f32 to vector<1x256xf32>
    %8 = arith.mulf %4, %7 : vector<1x256xf32>
    %cst_4 = arith.constant 2.500000e-01 : f32
    %9 = vector.broadcast %cst_4 : f32 to vector<1x256xf32>
    %10 = arith.mulf %6, %9 : vector<1x256xf32>
    %11 = arith.mulf %8, %8 : vector<1x256xf32>
    %12 = arith.subf %10, %11 : vector<1x256xf32>
    %cst_5 = arith.constant 9.99999974E-6 : f32
    %13 = vector.broadcast %cst_5 : f32 to vector<1x256xf32>
    %14 = arith.addf %12, %13 : vector<1x256xf32>
    %15 = math.rsqrt %14 : vector<1x256xf32>
    %c0_6 = arith.constant 0 : index
    %c0_7 = arith.constant 0 : index
    %16 = vector.load %arg3[%c0_6, %c0_7] : memref<4x1xf32, #tpu.memory_space<vmem>>, vector<4x1xf32>
    %17 = vector.broadcast %8 : vector<1x256xf32> to vector<4x256xf32>
    %18 = arith.subf %1, %17 : vector<4x256xf32>
    %19 = vector.broadcast %15 : vector<1x256xf32> to vector<4x256xf32>
    %20 = arith.mulf %18, %19 : vector<4x256xf32>
    %21 = vector.broadcast %16 : vector<4x1xf32> to vector<4x256xf32>
    %22 = arith.mulf %20, %21 : vector<4x256xf32>
    %c0_8 = arith.constant 0 : index
    %c0_9 = arith.constant 0 : index
    %c0_10 = arith.constant 0 : index
    %23 = vector.load %arg4[%c0_8, %c0_9, %c0_10] : memref<1x4x256xf32, #tpu.memory_space<vmem>>, vector<1x4x256xf32>
    %24 = vector.shape_cast %23 : vector<1x4x256xf32> to vector<4x256xf32>
    %25 = vector.shape_cast %22 : vector<4x256xf32> to vector<1x4x256xf32>
    tpu.vector_store %arg4[%c0_8, %c0_9, %c0_10], %25 {strides = array<i32>} : memref<1x4x256xf32, #tpu.memory_space<vmem>>, vector<1x4x256xf32>,
    return
  }
  func.func @transform_0(%arg0: i32, %arg1: i32) -> (i32, i32, i32) {
    %c0_i32 = arith.constant 0 : i32
    %c0_i32_0 = arith.constant 0 : i32
    return %arg0, %c0_i32, %arg1 : i32, i32, i32
  }
  func.func @transform_1(%arg0: i32, %arg1: i32) -> (i32, i32) {
    %c0_i32 = arith.constant 0 : i32
    %c0_i32_0 = arith.constant 0 : i32
    %c0_i32_1 = arith.constant 0 : i32
    return %c0_i32, %c0_i32_0 : i32, i32
  }
  func.func @transform_2(%arg0: i32, %arg1: i32) -> (i32, i32, i32) {
    %c0_i32 = arith.constant 0 : i32
    %c0_i32_0 = arith.constant 0 : i32
    return %arg0, %c0_i32, %arg1 : i32, i32, i32
  }
}

</mosaic_0001>

<bundles_post_ra>
// kernel: tpu_custom_call.1
= control target key start
LH: loop header
LB: loop body
LE: loop exit
PB: predicated region body
PF: predicated region fallthrough
CT: control target
= control target key end

     0   :  { %7 = vsyncpa [#allocation3], 0  ;;  %s738_s0 = inlined_call_operand.hbm [shape: f32[2,4,256], index: 0, kind: input, shape index: {}]   ;;  %s739_s1 = inlined_call_operand.vmem [shape: f32[4,1], index: 1, kind: input, shape index: {}]   ;;  %s740_s2 = inlined_call_operand.hbm [shape: f32[2,4,256], index: 2, kind: output, shape index: {}]  }
   0x1   :  { %9 = vsyncpa [#allocation3 + $0x1], 0 }
   0x2   :  { %10 = vsyncpa [#allocation4], 0 }
   0x3   :  { %12 = vsyncpa [#allocation4 + $0x1], 0  ;;  %s599_s9 = smov 0   ;;  %s601_s10 = smov 0  }
   0x4   :  { %s603_s11 = smov 0   ;;  %s605_s12 = smov 0  }
   0x5   :  { %s607_s13 = smov 0   ;;  %s609_s14 = smov 0  }
   0x6 LB: > { %s382_s15 = sadd.s32 4294967295, %s580_s14   ;;  %s383_s16 = sadd.s32 4294967294, %s580_s14   ;;  %s580_s14 = sphi %s609_s14, %s18_s14   ;;  %s576_s13 = sphi %s607_s13, %s749_s13   ;;  %s572_s12 = sphi %s605_s12, %s748_s12   ;;  %s568_s11 = sphi %s603_s11, %s747_s11   ;;  %s564_s10 = sphi %s601_s10, %s746_s10   ;;  %s560_s9 = sphi %s599_s9, %s745_s9  }
   0x7   : > { %s30_s17 = sadd.s32 1, %s576_s13  ;;  %s39_s18 = sadd.s32 1, %s568_s11 }
   0x8   : > { %p32_p0 = scmp.ge.s32.totalorder %s30_s17, 2  ;;  %p46_p1 = scmp.ne.s32.totalorder %s568_s11, %s564_s10 }
   0x9   : > { %p47_p2 = scmp.eq.s32.totalorder %s580_s14, 0  ;;  %p52_p3 = scmp.ne.s32.totalorder %s564_s10, %s560_s9 }
   0xa   : > { %s751_s17 = smov (%p32_p0, %s30_s17), 0  ;;  %p53_p5 = scmp.eq.s32.totalorder %s382_s15, 0 }
   0xb   : > { %p640_p4 = por %p47_p2, %p46_p1  ;;  %s34_s20 = ssub.s32 %s576_s13, %s751_s17 }
   0xc   : > { %p99_p6 = scmp.eq.s32.totalorder %s382_s15, 1  ;;  %p37_p7 = scmp.eq.s32.totalorder %s34_s20, 0 }
   0xd   : > { %p646_p8 = por %p53_p5, %p52_p3  ;;  %p105_p10 = scmp.eq.s32.totalorder %s383_s16, 1 }
   0xe   : > { %p650_p9 = por %p99_p6, %p46_p1  ;;  %p385_p12 = scmp.ge.s32.totalorder %s580_s14, 2 }
   0xf   : > { %s655_s23 = scalar_select %p37_p7, %s568_s11, %s39_s18  }
  0x10   : > { %p657_p11 = por %p105_p10, %p52_p3  ;;  %p411_p13 = scmp.lt.s32.totalorder %s580_s14, 2 }
  0x11   : > { %s128_s25 = sand.u32 1, %s568_s11   ;;  %s397_s27 = sshll.u32 %s576_s13, 3 }
  0x12   : > { %s386_s26 = sshll.u32 %s128_s25, 3  ;;  %s139_s30 = scalar_lea.hbm %s738_s0, %s397_s27 }
  0x13   : > { %s132_s3 = scalar_lea.vmem [#allocation2], %s386_s26  ;;  %s141_s5 = sshll.u32 %s139_s30, 4  ;;  %s142_s5 = int_to_ptr.hbm [resolvable:$true] %s141_s5 }
  0x14   : > { %s143_s4 = sshll.u32 %s132_s3, 4  ;;  %p404_p0 = pnand %p411_p13, %p640_p4  ;;  %s144_s4 = int_to_ptr.vmem [resolvable:$true] %s143_s4 }
  0x15   : > { %p389_p1 = scmp.ge.s32.totalorder %s580_s14, 1  ;;  %p148_p2 = scmp.lt.s32.totalorder %s580_s14, 3 }
  0x16   : > { %s129_s6 = scalar_lea.sflag [#allocation3], %s128_s25 }
  0x17   : > { %406 = dma.hbm_to_vmem [thread:$0]  (!%p404_p0), %s142_s5, 128, %s144_s4, %s129_s6  }
  0x18   : > { %p149_p3 = pnand %p389_p1, %p148_p2 }
  0x19   : > { %s673_s7 = sand.u32 (!%p149_p3), 1, %s564_s10  }
  0x1a   : > { %152 = sbr.rel (%p149_p3) target bundleno = 156 (0x9c), region = 28  ;;  %s390_s8 = sshll.u32 (!%p149_p3), %s673_s7, 3 }
  0x1b   : > { %s155_s15 = scalar_lea.sflag (!%p149_p3), [#allocation3], %s673_s7  ;;  %s158_s16 = scalar_lea.vmem (!%p149_p3), [#allocation2], %s390_s8 }
  0x1f   : > { %551 = dma.done.wait (%p646_p8), %s155_s15, 128  }
  0x20   : > { %553 = vsyncadd (%p646_p8), %s155_s15, 4294967168  ;;  %v582_v0 = vmov 0   ;;  %v255_v1 = vld [vmem:[%s739_s1] sm:$0xf]  ;;  %v686_v2 = vld [vmem:[%s158_s16] sm:$0xff]  ;;  %vm190_vm0 = vcmask 1043456  }
  0x21   : > { %463 = vset.pattern.permute.xlu0 %v582_v0  ;;  %185 = vst [vmem:[#allocation1] ss:$2 sm:$0xff] %v686_v2  ;;  %v183_v3 = vmul.f32 %v686_v2, %v686_v2  ;;  %v583_v62 = vmov 839922192   ;;  %s398_s20 = sshll.u32 %s572_s12, 3  ;;  %s179_s27 = scalar_lea.vmem [#allocation5], %s390_s8 }
  0x22   : > { %270 = vperm.xlu0 %463, %v255_v1   ;;  %v273_v63 = vunpack.c.l.s4 %v583_v62  ;;  %s293_s26 = scalar_lea.hbm %s740_s2, %s398_s20  ;;  %s295_s28 = sshll.u32 %s179_s27, 4  ;;  %s296_s28 = int_to_ptr.vmem [resolvable:$true] %s295_s28 }
  0x23   : > { %s297_s29 = sshll.u32 %s293_s26, 4  ;;  %s280_s12 = scalar_lea.sflag [#allocation4], %s673_s7  ;;  %s298_s29 = int_to_ptr.hbm [resolvable:$true] %s297_s29 }
  0x24   : > { %s512_s30 = sshra.s32 %s298_s29, 4  ;;  %s518_s6 = scalar_lea.hbm %s740_s2, 16  ;;  %s513_s30 = int_to_ptr.hbm [resolvable:$true] %s512_s30 }
  0x25   : > { %s514_s3 = scalar_lea.hbm %s513_s30, 8  ;;  %p519_p7 = scmp.lt.s32.totalorder %s513_s30, %s740_s2 }
  0x26   : > { %p515_p4 = scmp.ne.s32.totalorder %s513_s30, %s514_s3  ;;  %p520_p8 = scmp.lt.s32.totalorder %s518_s6, %s514_s3 }
  0x28   : > { %v186_v4 = vld.sshfl [vmem:[#allocation1] sm:$0xff pattern:$0x75316420]  ;;  %v187_v5 = vld.sshfl [vmem:[#allocation1 + $0x8] sm:$0xff pattern:$0x75316420]  ;;  %p516_p5 = pnand %p515_p4, %p650_p9  ;;  %p521_p10 = por %p520_p8, %p519_p7 }
  0x29   : > { %206 = vst [vmem:[#allocation1] ss:$2 sm:$0xff] %v183_v3  ;;  %v198_v6 = vsel %vm190_vm0, %v187_v5, 0.0  ;;  %v191_v9 = vsel %vm190_vm0, %v186_v4, 0.0  ;;  %v274_v4 = vunpack.c.0.s8 %v273_v63 }
  0x2a   : > { %v199_v7 = vrot.slane %v198_v6, 4  ;;  %v192_v11 = vrot.slane %v191_v9, 4  ;;  %p517_p6 = pneg %p516_p5 }
  0x2c   : > { %v200_v12 = vadd.f32 %v199_v7, %v198_v6  ;;  %v193_v16 = vadd.f32 %v192_v11, %v191_v9  ;;  %p522_p13 = pnand %p521_p10, %p517_p6 }
  0x2e   : > { %v201_v17 = vrot.slane %v200_v12, 2  ;;  %v194_v20 = vrot.slane %v193_v16, 2 }
  0x30   : > { %v208_v8 = vld.sshfl [vmem:[#allocation1 + $0x8] sm:$0xff pattern:$0x75316420]  ;;  %v207_v13 = vld.sshfl [vmem:[#allocation1] sm:$0xff pattern:$0x75316420]  ;;  %v202_v21 = vadd.f32 %v201_v17, %v200_v12  ;;  %v195_v24 = vadd.f32 %v194_v20, %v193_v16 }
  0x31   : > { %v218_v10 = vsel %vm190_vm0, %v208_v8, 0.0  ;;  %v211_v15 = vsel %vm190_vm0, %v207_v13, 0.0 }
  0x32   : > { %v219_v14 = vrot.slane %v218_v10, 4  ;;  %v212_v18 = vrot.slane %v211_v15, 4  ;;  %v203_v25 = vrot.slane %v202_v21, 1  ;;  %v196_v28 = vrot.slane %v195_v24, 1 }
  0x34   : > { %v220_v19 = vadd.f32 %v219_v14, %v218_v10  ;;  %v213_v22 = vadd.f32 %v212_v18, %v211_v15  ;;  %v204_v29 = vadd.f32 %v203_v25, %v202_v21  ;;  %v197_v32 = vadd.f32 %v196_v28, %v195_v24 }
  0x36   : > { %v221_v23 = vrot.slane %v220_v19, 2  ;;  %v214_v26 = vrot.slane %v213_v22, 2  ;;  %v226_v35 = vmul.f32 0.25, %v204_v29  ;;  %v225_v37 = vmul.f32 0.25, %v197_v32 }
  0x38   : > { %v222_v27 = vadd.f32 %v221_v23, %v220_v19  ;;  %v215_v30 = vadd.f32 %v214_v26, %v213_v22  ;;  %v230_v39 = vmul.f32 %v226_v35, %v226_v35  ;;  %v229_v41 = vmul.f32 %v225_v37, %v225_v37 }
  0x39   : > { %v258_v57 = vrot.slane %v226_v35, 4 }
  0x3a   : > { %v223_v31 = vrot.slane %v222_v27, 1  ;;  %v216_v33 = vrot.slane %v215_v30, 1 }
  0x3b   : > { %v259_v60 = vsel %vm190_vm0, %v225_v37, %v258_v57 }
  0x3c   : > { %v224_v34 = vadd.f32 %v223_v31, %v222_v27  ;;  %v217_v36 = vadd.f32 %v216_v33, %v215_v30  ;;  %v261_v1 = vsub.f32 %v686_v2, %v259_v60 }
  0x3e   : > { %v228_v38 = vmul.f32 0.25, %v224_v34  ;;  %v227_v40 = vmul.f32 0.25, %v217_v36 }
  0x40   : > { %v232_v42 = vsub.f32 %v228_v38, %v230_v39  ;;  %v231_v43 = vsub.f32 %v227_v40, %v229_v41 }
  0x42   : > { %v234_v44 = vadd.f32 1e-05, %v232_v42  ;;  %v233_v45 = vadd.f32 1e-05, %v231_v43 }
  0x44   : > { %464 = vrsqrt.f32 %v234_v44  ;;  %vm251_vm1 = vweird.f32 %v234_v44  ;;  %vm241_vm4 = vweird.f32 %v233_v45 }
  0x45   : > { %466 = vrsqrt.f32 %v233_v45 }
  0x4a   : > { %v465_v46 = vpop.eup %464 }
  0x4b   : > { %v246_v47 = vmul.f32 %v465_v46, %v234_v44  ;;  %v467_v48 = vpop.eup %466  ;;  %vm252_vm2 = vweird.f32 %v465_v46 }
  0x4c   : > { %v236_v49 = vmul.f32 %v467_v48, %v233_v45  ;;  %vm253_vm3 = vmor %vm251_vm1, %vm252_vm2  ;;  %vm242_vm5 = vweird.f32 %v467_v48 }
  0x4d   : > { %v247_v50 = vmul.f32 %v465_v46, %v246_v47  ;;  %vm243_vm6 = vmor %vm241_vm4, %vm242_vm5 }
  0x4e   : > { %v237_v51 = vmul.f32 %v467_v48, %v236_v49 }
  0x4f   : > { %v248_v52 = vmul.f32 0.5, %v247_v50 }
  0x50   : > { %v238_v53 = vmul.f32 0.5, %v237_v51 }
  0x51   : > { %v249_v54 = vsub.f32 1.5, %v248_v52 }
  0x52   : > { %v239_v55 = vsub.f32 1.5, %v238_v53 }
  0x53   : > { %v250_v56 = vmul.f32 %v465_v46, %v249_v54 }
  0x54   : > { %v240_v58 = vmul.f32 %v467_v48, %v239_v55 }
  0x55   : > { %v254_v59 = vsel %vm253_vm3, %v465_v46, %v250_v56 }
  0x56   : > { %v264_v61 = vrot.slane %v254_v59, 4  ;;  %v244_v0 = vsel %vm243_vm6, %v467_v48, %v240_v58 }
  0x58   : > { %v265_v3 = vsel %vm190_vm0, %v244_v0, %v264_v61 }
  0x59   : > { %v267_v5 = vmul.f32 %v265_v3, %v261_v1 }
  0x94   : > { %v271_v6 = vpop.permute.xlu0 %270 }
  0x95   : > { %v275_v7 = vperm.slane %v271_v6, %v274_v4 }
  0x97   : > { %v277_v8 = vmul.f32 %v275_v7, %v267_v5 }
  0x99   : > { %278 = vst [vmem:[%s179_s27] sm:$0xff] %v277_v8 }
  0x9a   : > { %525 = shalt.err (!%p522_p13)
}
  0x9b   : > { %401 = dma.vmem_to_hbm [thread:$0]  (%p650_p9), %s296_s28, 128, %s298_s29, %s280_s12  }
  0x9c PF: > { %s309_s7 = sand.u32 1, %s560_s9   ;;  %p408_p0 = pnand %p385_p12, %p657_p11 }
  0x9d   : > { %s310_s16 = scalar_lea.sflag [#allocation4], %s309_s7 }
  0x9e   : > { %p409_p1 = pneg %p408_p0 }
  0xa0   : > { %555 = dma.done.wait (%p409_p1), %s310_s16, 128  }
  0xa1   : > { %557 = vsyncadd (%p409_p1), %s310_s16, 4294967168  ;;  %s18_s14 = sadd.s32 1, %s580_s14   ;;  %s745_s9 = smov %s564_s10 }
  0xa2   : > { %p15_p2 = scmp.ge.s32.totalorder %s18_s14, 4   ;;  %s746_s10 = smov %s568_s11 }
  0xa3   : > { %s747_s11 = smov %s655_s23  ;;  %s748_s12 = smov %s576_s13 }
  0xa4   : > { %s749_s13 = smov %s751_s17  ;;  %17 = sbr.rel (!%p15_p2) target bundleno = 6 (0x6), region = 73 }
  0xa9   :  { %316 = vsyncpa [#allocation3], 1 }
  0xaa   :  { %318 = vsyncpa [#allocation3 + $0x1], 1 }
  0xab   :  { %319 = vsyncpa [#allocation4], 1 }
  0xac   :  { %321 = vsyncpa [#allocation4 + $0x1], 1 }

</bundles_post_ra>
